<compile_context>
chip_gen: v7x
topology: tpu7x:2x2x1
jax: 0.10.0
libtpu: 0.0.40
codegen_flags: <defaults>
</compile_context>

<pallas_src>
import functools

import jax
import jax.numpy as jnp
from jax import lax
from jax.experimental import pallas as pl
from jax.experimental.pallas import tpu as pltpu


def bert_embeddings_kernel(
    # scalar prefetch
    ids_ref,        # (n_pad,) int32 flattened word ids in SMEM (DMA row addresses)
    # inputs
    word_hbm,       # (vocab, H) word-embedding table, left in HBM (pl.ANY)
    pos_ids_ref,    # (T, 1) int32 position ids for this tile
    tt_ids_ref,     # (T, 1) int32 token-type ids for this tile
    pos_tab_ref,    # (2, P, H) bf16 position table split into hi/lo halves (VMEM resident)
    type_tab_ref,   # (V, H) token-type table (VMEM resident)
    g_ref,          # (1, H) LayerNorm gamma
    b_ref,          # (1, H) LayerNorm beta
    # outputs
    o_ref,          # (T, H) output tile
    # scratch
    we_buf,         # (n_chunks, Tc, H) gathered word-embedding rows
    sem,            # (n_chunks,) DMA semaphores
    *, eps, tokens_per_chunk, n_chunks):
    T, H = o_ref.shape
    Tc = tokens_per_chunk
    P = pos_tab_ref.shape[1]
    V = type_tab_ref.shape[0]
    t = pl.program_id(0)

    def issue_chunk(c):
        base = t * T + c * Tc

        def body(i, carry):
            row = ids_ref[base + i]
            pltpu.make_async_copy(
                word_hbm.at[pl.ds(row, 1)],        # (1, H) row in HBM
                we_buf.at[c, pl.ds(i, 1)],         # (1, H) slot in VMEM scratch
                sem.at[c],
            ).start()
            return carry

        lax.fori_loop(0, Tc, body, 0)

    def wait_chunk(c):
        def body(i, carry):
            pltpu.make_async_copy(
                word_hbm.at[pl.ds(0, 1)],          # dummy src, sizes the wait
                we_buf.at[c, pl.ds(i, 1)],
                sem.at[c],
            ).wait()
            return carry

        lax.fori_loop(0, Tc, body, 0)

    # Kick off the whole tile's row gather up front: n_chunks * Tc row DMAs in flight.
    for c in range(n_chunks):
        issue_chunk(c)

    # Hoisted loads (resident tables / LN params); f32 math throughout.
    gamma = g_ref[...].astype(jnp.float32)
    beta = b_ref[...].astype(jnp.float32)
    pos_hi = pos_tab_ref[0]                         # (P, H) bf16
    pos_lo = pos_tab_ref[1]                         # (P, H) bf16
    type_tab = type_tab_ref[...].astype(jnp.float32)
    inv_h = jnp.float32(1.0 / H)
    eps_f = jnp.float32(eps)

    for c in range(n_chunks):
        # Chunk c's rows are ready; later chunks' DMAs keep streaming under this compute.
        wait_chunk(c)
        we = we_buf[c].astype(jnp.float32)                       # (Tc, H)
        pos_ids = pos_ids_ref[pl.ds(c * Tc, Tc), :]              # (Tc, 1) int32
        tt_ids = tt_ids_ref[pl.ds(c * Tc, Tc), :]                # (Tc, 1) int32

        # Position embedding: in-kernel gather via one-hot matmul on the (idle) MXU.
        # Exact: one-hot rows are 0/1 (exact in bf16), hi+lo reconstructs f32 values.
        oh = (pos_ids == lax.broadcasted_iota(jnp.int32, (Tc, P), 1)).astype(jnp.bfloat16)
        pe = (jnp.dot(oh, pos_hi, preferred_element_type=jnp.float32)
              + jnp.dot(oh, pos_lo, preferred_element_type=jnp.float32))
        x = we + pe

        # Token-type embedding.
        if V == 2:
            ttf = tt_ids.astype(jnp.float32)                     # (Tc, 1)
            x = x + type_tab[0:1, :] + ttf * (type_tab[1:2, :] - type_tab[0:1, :])
        else:
            for k in range(V):                                   # V tiny; unrolled at trace time
                sel = (tt_ids == k).astype(jnp.float32)
                x = x + sel * type_tab[k:k + 1, :]

        # LayerNorm (TF-style): mean and E[x^2] as two independent reductions, rsqrt on EUP.
        s1 = jnp.sum(x, axis=-1, keepdims=True) * inv_h
        s2 = jnp.sum(x * x, axis=-1, keepdims=True) * inv_h
        var = s2 - s1 * s1
        y = (x - s1) * lax.rsqrt(var + eps_f)
        o_ref[pl.ds(c * Tc, Tc), :] = (gamma * y + beta).astype(o_ref.dtype)
    # TODO(synk): training-mode dropout (nn.Dropout) not implemented; eval semantics -> identity.


def bert_embeddings(input_ids, token_type_ids, position_ids,
                    word_emb, pos_emb, type_emb, ln_gamma, ln_beta,
                    eps=1e-12, tokens_per_tile=512, out_dtype=None):
    B, S = input_ids.shape
    H = word_emb.shape[1]
    P = pos_emb.shape[0]
    V = type_emb.shape[0]
    n = B * S

    # module-default semantics for optional ids
    if position_ids is None:
        position_ids = jnp.broadcast_to(jnp.arange(S, dtype=jnp.int32)[None, :], (B, S))
    if token_type_ids is None:
        token_type_ids = jnp.zeros((B, S), jnp.int32)

    ids = input_ids.reshape(n).astype(jnp.int32)
    pos = position_ids.reshape(n).astype(jnp.int32)
    tt = token_type_ids.reshape(n).astype(jnp.int32)

    out_dtype = word_emb.dtype if out_dtype is None else jnp.dtype(out_dtype)
    tab_itm = jnp.dtype(word_emb.dtype).itemsize
    out_itm = jnp.dtype(out_dtype).itemsize

    # --- token tile size: big tiles, per-generation VMEM budget, >= 2 tiles for v7x ---
    sub = 16 if min(tab_itm, out_itm) < 4 else 8            # bf16 sublane packing needs x16
    def _round(t):
        return max(sub, (t // sub) * sub)
    T = _round(min(int(tokens_per_tile), ((n + sub - 1) // sub) * sub))

    VMEM_BUDGET = 48 * 1024 * 1024   # safe on v7x (64 MiB physical); far under v5e/v6e 128 MiB
    def _vmem_est(t):
        return (2 * t * H * out_itm                          # double-buffered output blocks
                + 2 * 2 * t * 4                              # pos / token-type id blocks
                + 2 * (2 * P * 2 + V * tab_itm + 2 * tab_itm) * H   # resident tables (x2 buffers)
                + t * H * tab_itm)                           # word-row gather scratch
    while _vmem_est(T) > VMEM_BUDGET and T > sub:
        T = _round(T // 2)
    # keep >= 2 tiles so both v7x TensorCores get work on the "parallel" grid axis
    if (n + T - 1) // T < 2 and T > sub:
        T = _round(max(sub, T // 2))

    num_tiles = (n + T - 1) // T
    n_pad = num_tiles * T
    pad = n_pad - n
    if pad:
        ids = jnp.pad(ids, ((0, pad),))
        pos = jnp.pad(pos, ((0, pad),))
        tt = jnp.pad(tt, ((0, pad),))

    pos2d = pos.reshape(n_pad, 1)
    tt2d = tt.reshape(n_pad, 1)
    gamma2d = ln_gamma.reshape(1, H)
    beta2d = ln_beta.reshape(1, H)

    # Position table resident in VMEM, split into bf16 hi/lo so the one-hot MXU gather is exact.
    pos_hi = pos_emb.astype(jnp.bfloat16)
    pos_lo = (pos_emb.astype(jnp.float32) - pos_hi.astype(jnp.float32)).astype(jnp.bfloat16)
    pos_tab2 = jnp.stack([pos_hi, pos_lo], axis=0)           # (2, P, H) bf16

    # within-tile chunking: chunk c+1's gather DMAs overlap chunk c's LayerNorm
    n_chunks = 2 if (T % (2 * sub) == 0) else 1
    Tc = T // n_chunks

    cost = pl.CostEstimate(
        flops=int(n_pad * (4 * P * H + 12 * H)),             # one-hot gather matmuls + LN/adds
        transcendentals=int(n_pad),                          # rsqrt per token
        bytes_accessed=int(3 * n_pad * 4                     # word / position / token-type ids
                           + n_pad * H * tab_itm             # gathered word rows from HBM
                           + (2 * P * 2 + (V + 2) * tab_itm) * H   # resident tables + LN params
                           + n_pad * H * out_itm),           # output
    )

    grid_spec = pltpu.PrefetchScalarGridSpec(
        num_scalar_prefetch=1,                               # flattened word ids -> SMEM
        grid=(num_tiles,),
        in_specs=[
            pl.BlockSpec(memory_space=pl.ANY),               # word table stays in HBM
            pl.BlockSpec((T, 1), lambda t, ids: (t, 0)),     # position ids
            pl.BlockSpec((T, 1), lambda t, ids: (t, 0)),     # token-type ids
            pl.BlockSpec((2, P, H), lambda t, ids: (0, 0, 0)),  # position table (resident)
            pl.BlockSpec((V, H), lambda t, ids: (0, 0)),     # token-type table (resident)
            pl.BlockSpec((1, H), lambda t, ids: (0, 0)),     # LayerNorm gamma
            pl.BlockSpec((1, H), lambda t, ids: (0, 0)),     # LayerNorm beta
        ],
        out_specs=pl.BlockSpec((T, H), lambda t, ids: (t, 0)),
        scratch_shapes=[
            pltpu.VMEM((n_chunks, Tc, H), word_emb.dtype),   # gathered word rows
            pltpu.SemaphoreType.DMA((n_chunks,)),
        ],
    )

    out = pl.pallas_call(
        functools.partial(bert_embeddings_kernel, eps=eps,
                          tokens_per_chunk=Tc, n_chunks=n_chunks),
        out_shape=jax.ShapeDtypeStruct((n_pad, H), out_dtype),
        grid_spec=grid_spec,
        compiler_params=pltpu.CompilerParams(
            dimension_semantics=("parallel",),
            vmem_limit_bytes=int(min(VMEM_BUDGET,
                                     max(2 * _vmem_est(T), 32 * 1024 * 1024))),
        ),
        cost_estimate=cost,
    )(ids, word_emb, pos2d, tt2d, pos_tab2, type_emb, gamma2d, beta2d)

    return out[:n].reshape(B, S, H)


def bert_embeddings_ref(input_ids, token_type_ids, position_ids,
                        word_emb, pos_emb, type_emb, ln_gamma, ln_beta, eps=1e-12):
    x = word_emb[input_ids] + pos_emb[position_ids] + type_emb[token_type_ids]
    u = jnp.mean(x, axis=-1, keepdims=True)
    s = jnp.mean((x - u) ** 2, axis=-1, keepdims=True)
    x = (x - u) / jnp.sqrt(s + eps)
    return ln_gamma * x + ln_beta


if __name__ == "__main__":
    # small, BERT-like config
    vocab_size = 128
    max_position_embeddings = 64
    type_vocab_size = 2
    hidden_size = 128
    layer_norm_eps = 1e-12

    key = jax.random.PRNGKey(0)
    k_we, k_pe, k_te, k_ids, k_tt, k_ids2 = jax.random.split(key, 6)

    # deterministic parameter init (shapes from the module's __init__)
    word_emb = 0.02 * jax.random.normal(k_we, (vocab_size, hidden_size), jnp.float32)
    word_emb = word_emb.at[0].set(0.0)  # padding_idx=0
    pos_emb = 0.02 * jax.random.normal(k_pe, (max_position_embeddings, hidden_size), jnp.float32)
    type_emb = 0.02 * jax.random.normal(k_te, (type_vocab_size, hidden_size), jnp.float32)
    ln_gamma = jnp.ones((hidden_size,), jnp.float32)
    ln_beta = jnp.zeros((hidden_size,), jnp.float32)

    # Case 1: explicit token-type / position ids (B=2, S=8).
    B, S = 2, 8
    input_ids = jax.random.randint(k_ids, (B, S), 1, vocab_size, dtype=jnp.int32)
    token_type_ids = jax.random.randint(k_tt, (B, S), 0, type_vocab_size, dtype=jnp.int32)
    position_ids = jnp.broadcast_to(jnp.arange(S, dtype=jnp.int32)[None, :], (B, S))

    out = bert_embeddings(input_ids, token_type_ids, position_ids,
                          word_emb, pos_emb, type_emb, ln_gamma, ln_beta,
                          eps=layer_norm_eps)
    out = jax.block_until_ready(out)
    ref = bert_embeddings_ref(input_ids, token_type_ids, position_ids,
                              word_emb, pos_emb, type_emb, ln_gamma, ln_beta,
                              eps=layer_norm_eps)
    assert out.shape == (B, S, hidden_size)
    assert jnp.allclose(out, ref, atol=1e-5, rtol=1e-5)

    # Case 2: default (None) ids, ragged token count (exercises padding + 2-chunk overlap path).
    B2, S2 = 3, 20
    input_ids2 = jax.random.randint(k_ids2, (B2, S2), 1, vocab_size, dtype=jnp.int32)
    out2 = bert_embeddings(input_ids2, None, None,
                           word_emb, pos_emb, type_emb, ln_gamma, ln_beta,
                           eps=layer_norm_eps)
    out2 = jax.block_until_ready(out2)
    pos2 = jnp.broadcast_to(jnp.arange(S2, dtype=jnp.int32)[None, :], (B2, S2))
    ref2 = bert_embeddings_ref(input_ids2, jnp.zeros((B2, S2), jnp.int32), pos2,
                               word_emb, pos_emb, type_emb, ln_gamma, ln_beta,
                               eps=layer_norm_eps)
    assert out2.shape == (B2, S2, hidden_size)
    assert jnp.allclose(out2, ref2, atol=1e-5, rtol=1e-5)

    print("KERNEL_OK")
</pallas_src>

<mosaic_0001>
module attributes {stable_mosaic.version = 11 : i64} {
  func.func @bert_embeddings_kernel(%arg0: i32, %arg1: memref<16xi32, #tpu.memory_space<smem>>, %arg2: memref<128x128xf32, #tpu.memory_space<any>>, %arg3: memref<8x1xi32, #tpu.memory_space<vmem>>, %arg4: memref<8x1xi32, #tpu.memory_space<vmem>>, %arg5: memref<2x64x128xbf16, #tpu.memory_space<vmem>>, %arg6: memref<2x128xf32, #tpu.memory_space<vmem>>, %arg7: memref<1x128xf32, #tpu.memory_space<vmem>>, %arg8: memref<1x128xf32, #tpu.memory_space<vmem>>, %arg9: memref<8x128xf32, #tpu.memory_space<vmem>>, %arg10: memref<1x8x128xf32, #tpu.memory_space<vmem>>, %arg11: memref<1x!tpu.dma_semaphore, #tpu.memory_space<semaphore_mem>>) attributes {dimension_semantics = [#tpu.dimension_semantics<parallel>], iteration_bounds = array<i64: 2>, scalar_prefetch = 1 : i64, scratch_operands = 2 : i64, tpu.core_type = #tpu.core_type<tc>, window_params = [{}, {transform_indices = @transform_1, window_bounds = array<i64: 8, 1>}, {transform_indices = @transform_2, window_bounds = array<i64: 8, 1>}, {pipeline_mode = #tpu.pipeline_mode<synchronous>, transform_indices = @transform_3, window_bounds = array<i64: 2, 64, 128>}, {pipeline_mode = #tpu.pipeline_mode<synchronous>, transform_indices = @transform_4, window_bounds = array<i64: 2, 128>}, {pipeline_mode = #tpu.pipeline_mode<synchronous>, transform_indices = @transform_5, window_bounds = array<i64: 1, 128>}, {pipeline_mode = #tpu.pipeline_mode<synchronous>, transform_indices = @transform_6, window_bounds = array<i64: 1, 128>}, {transform_indices = @transform_7, window_bounds = array<i64: 8, 128>}]} {
    %c8_i32 = arith.constant 8 : i32
    %0 = arith.muli %arg0, %c8_i32 : i32
    %c0_i32 = arith.constant 0 : i32
    %1 = arith.addi %0, %c0_i32 : i32
    %c0_i32_0 = arith.constant 0 : i32
    %c8_i32_1 = arith.constant 8 : i32
    %2 = arith.addi %c0_i32_0, %c8_i32_1 : i32
    %c1_i32 = arith.constant 1 : i32
    scf.for %arg12 = %c0_i32_0 to %2 step %c1_i32  : i32 {
      %59 = arith.addi %1, %arg12 : i32
      %60 = arith.index_cast %59 : i32 to index
      %61 = memref.load %arg1[%60] : memref<16xi32, #tpu.memory_space<smem>>
      %c0_i32_32 = arith.constant 0 : i32
      %c0_i32_33 = arith.constant 0 : i32
      %c0_i32_34 = arith.constant 0 : i32
      %62 = tpu.memref_slice %arg2[%61, %c0_i32_34] : memref<128x128xf32, #tpu.memory_space<any>> -> memref<1x128xf32, #tpu.memory_space<any>>
      %c0_i32_35 = arith.constant 0 : i32
      %63 = tpu.memref_slice %arg10[%c0_i32_32, %arg12, %c0_i32_35] : memref<1x8x128xf32, #tpu.memory_space<vmem>> -> memref<1x1x128xf32, #tpu.memory_space<vmem>>
      %64 = tpu.memref_squeeze %63 : memref<1x1x128xf32, #tpu.memory_space<vmem>> -> memref<1x128xf32, #tpu.memory_space<vmem>>
      %65 = tpu.memref_slice %arg11[%c0_i32_33] : memref<1x!tpu.dma_semaphore, #tpu.memory_space<semaphore_mem>> -> memref<1x!tpu.dma_semaphore, #tpu.memory_space<semaphore_mem>>
      %66 = tpu.memref_squeeze %65 : memref<1x!tpu.dma_semaphore, #tpu.memory_space<semaphore_mem>> -> memref<!tpu.dma_semaphore, #tpu.memory_space<semaphore_mem>>
      tpu.enqueue_dma source(%62 : memref<1x128xf32, #tpu.memory_space<any>>) target(%64 : memref<1x128xf32, #tpu.memory_space<vmem>>) target_semaphore(%66 : memref<!tpu.dma_semaphore, #tpu.memory_space<semaphore_mem>>)
    }
    %c8_i32_2 = arith.constant 8 : i32
    %c0 = arith.constant 0 : index
    %c0_3 = arith.constant 0 : index
    %3 = vector.load %arg7[%c0, %c0_3] : memref<1x128xf32, #tpu.memory_space<vmem>>, vector<1x128xf32>
    %c0_4 = arith.constant 0 : index
    %c0_5 = arith.constant 0 : index
    %4 = vector.load %arg8[%c0_4, %c0_5] : memref<1x128xf32, #tpu.memory_space<vmem>>, vector<1x128xf32>
    %c0_6 = arith.constant 0 : index
    %c0_7 = arith.constant 0 : index
    %c0_8 = arith.constant 0 : index
    %5 = vector.load %arg5[%c0_6, %c0_7, %c0_8] : memref<2x64x128xbf16, #tpu.memory_space<vmem>>, vector<1x64x128xbf16>
    %6 = vector.shape_cast %5 : vector<1x64x128xbf16> to vector<64x128xbf16>
    %c1 = arith.constant 1 : index
    %c0_9 = arith.constant 0 : index
    %c0_10 = arith.constant 0 : index
    %7 = vector.load %arg5[%c1, %c0_9, %c0_10] : memref<2x64x128xbf16, #tpu.memory_space<vmem>>, vector<1x64x128xbf16>
    %8 = vector.shape_cast %7 : vector<1x64x128xbf16> to vector<64x128xbf16>
    %c0_11 = arith.constant 0 : index
    %c0_12 = arith.constant 0 : index
    %9 = vector.load %arg6[%c0_11, %c0_12] : memref<2x128xf32, #tpu.memory_space<vmem>>, vector<2x128xf32>
    %c0_i32_13 = arith.constant 0 : i32
    %c8_i32_14 = arith.constant 8 : i32
    %10 = arith.addi %c0_i32_13, %c8_i32_14 : i32
    %c1_i32_15 = arith.constant 1 : i32
    scf.for %arg12 = %c0_i32_13 to %10 step %c1_i32_15  : i32 {
      %c0_i32_32 = arith.constant 0 : i32
      %c0_i32_33 = arith.constant 0 : i32
      %c0_i32_34 = arith.constant 0 : i32
      %c0_i32_35 = arith.constant 0 : i32
      %59 = tpu.memref_slice %arg2[%c0_i32_34, %c0_i32_35] : memref<128x128xf32, #tpu.memory_space<any>> -> memref<1x128xf32, #tpu.memory_space<any>>
      %c0_i32_36 = arith.constant 0 : i32
      %60 = tpu.memref_slice %arg10[%c0_i32_32, %arg12, %c0_i32_36] : memref<1x8x128xf32, #tpu.memory_space<vmem>> -> memref<1x1x128xf32, #tpu.memory_space<vmem>>
      %61 = tpu.memref_squeeze %60 : memref<1x1x128xf32, #tpu.memory_space<vmem>> -> memref<1x128xf32, #tpu.memory_space<vmem>>
      %62 = tpu.memref_slice %arg11[%c0_i32_33] : memref<1x!tpu.dma_semaphore, #tpu.memory_space<semaphore_mem>> -> memref<1x!tpu.dma_semaphore, #tpu.memory_space<semaphore_mem>>
      %63 = tpu.memref_squeeze %62 : memref<1x!tpu.dma_semaphore, #tpu.memory_space<semaphore_mem>> -> memref<!tpu.dma_semaphore, #tpu.memory_space<semaphore_mem>>
      tpu.wait_dma2 semaphore(%63 : memref<!tpu.dma_semaphore, #tpu.memory_space<semaphore_mem>>) src(%59 : memref<1x128xf32, #tpu.memory_space<any>>) dst(%61 : memref<1x128xf32, #tpu.memory_space<vmem>>)
    }
    %c8_i32_16 = arith.constant 8 : i32
    %c0_17 = arith.constant 0 : index
    %c0_18 = arith.constant 0 : index
    %c0_19 = arith.constant 0 : index
    %11 = vector.load %arg10[%c0_17, %c0_18, %c0_19] : memref<1x8x128xf32, #tpu.memory_space<vmem>>, vector<1x8x128xf32>
    %12 = vector.shape_cast %11 : vector<1x8x128xf32> to vector<8x128xf32>
    %c0_20 = arith.constant 0 : index
    %c0_21 = arith.constant 0 : index
    %13 = vector.load %arg3[%c0_20, %c0_21] : memref<8x1xi32, #tpu.memory_space<vmem>>, vector<8x1xi32>
    %c0_22 = arith.constant 0 : index
    %c0_23 = arith.constant 0 : index
    %14 = vector.load %arg4[%c0_22, %c0_23] : memref<8x1xi32, #tpu.memory_space<vmem>>, vector<8x1xi32>
    %15 = tpu.iota {dimensions = array<i32: 1>} : vector<8x64xi32>
    %16 = vector.broadcast %13 : vector<8x1xi32> to vector<8x64xi32>
    %17 = arith.cmpi eq, %16, %15 : vector<8x64xi32>
    %18 = arith.extui %17 : vector<8x64xi1> to vector<8x64xi32>
    %19 = arith.sitofp %18 : vector<8x64xi32> to vector<8x64xf32>
    %20 = arith.truncf %19 : vector<8x64xf32> to vector<8x64xbf16>
    %cst = arith.constant dense<0.000000e+00> : vector<8x128xf32>
    %21 = tpu.matmul %20, %6, %cst {dimension_numbers = #tpu.dot_dimension_numbers<[1], [0], [0], [1], [0, 0, 1, 1], [], []>} : vector<8x64xbf16>, vector<64x128xbf16>, vector<8x128xf32> -> vector<8x128xf32>
    %cst_24 = arith.constant dense<0.000000e+00> : vector<8x128xf32>
    %22 = tpu.matmul %20, %8, %cst_24 {dimension_numbers = #tpu.dot_dimension_numbers<[1], [0], [0], [1], [0, 0, 1, 1], [], []>} : vector<8x64xbf16>, vector<64x128xbf16>, vector<8x128xf32> -> vector<8x128xf32>
    %23 = arith.addf %21, %22 : vector<8x128xf32>
    %24 = arith.addf %12, %23 : vector<8x128xf32>
    %25 = arith.sitofp %14 : vector<8x1xi32> to vector<8x1xf32>
    %26 = vector.extract_strided_slice %9 {offsets = [0, 0], sizes = [1, 128], strides = [1, 1]} : vector<2x128xf32> to vector<1x128xf32>
    %27 = vector.broadcast %26 : vector<1x128xf32> to vector<8x128xf32>
    %28 = arith.addf %24, %27 : vector<8x128xf32>
    %29 = vector.extract_strided_slice %9 {offsets = [1, 0], sizes = [1, 128], strides = [1, 1]} : vector<2x128xf32> to vector<1x128xf32>
    %30 = vector.extract_strided_slice %9 {offsets = [0, 0], sizes = [1, 128], strides = [1, 1]} : vector<2x128xf32> to vector<1x128xf32>
    %31 = arith.subf %29, %30 : vector<1x128xf32>
    %32 = vector.broadcast %25 : vector<8x1xf32> to vector<8x128xf32>
    %33 = vector.broadcast %31 : vector<1x128xf32> to vector<8x128xf32>
    %34 = arith.mulf %32, %33 : vector<8x128xf32>
    %35 = arith.addf %28, %34 : vector<8x128xf32>
    %cst_25 = arith.constant dense<0.000000e+00> : vector<8xf32>
    %36 = vector.multi_reduction <add>, %35, %cst_25 [1] : vector<8x128xf32> to vector<8xf32>
    %37 = vector.shape_cast %36 : vector<8xf32> to vector<8x1xf32>
    %cst_26 = arith.constant 7.812500e-03 : f32
    %38 = vector.broadcast %cst_26 : f32 to vector<8x1xf32>
    %39 = arith.mulf %37, %38 : vector<8x1xf32>
    %40 = arith.mulf %35, %35 : vector<8x128xf32>
    %cst_27 = arith.constant dense<0.000000e+00> : vector<8xf32>
    %41 = vector.multi_reduction <add>, %40, %cst_27 [1] : vector<8x128xf32> to vector<8xf32>
    %42 = vector.shape_cast %41 : vector<8xf32> to vector<8x1xf32>
    %cst_28 = arith.constant 7.812500e-03 : f32
    %43 = vector.broadcast %cst_28 : f32 to vector<8x1xf32>
    %44 = arith.mulf %42, %43 : vector<8x1xf32>
    %45 = arith.mulf %39, %39 : vector<8x1xf32>
    %46 = arith.subf %44, %45 : vector<8x1xf32>
    %47 = vector.broadcast %39 : vector<8x1xf32> to vector<8x128xf32>
    %48 = arith.subf %35, %47 : vector<8x128xf32>
    %cst_29 = arith.constant 9.99999996E-13 : f32
    %49 = vector.broadcast %cst_29 : f32 to vector<8x1xf32>
    %50 = arith.addf %46, %49 : vector<8x1xf32>
    %51 = math.rsqrt %50 : vector<8x1xf32>
    %52 = vector.broadcast %51 : vector<8x1xf32> to vector<8x128xf32>
    %53 = arith.mulf %48, %52 : vector<8x128xf32>
    %54 = vector.broadcast %3 : vector<1x128xf32> to vector<8x128xf32>
    %55 = arith.mulf %54, %53 : vector<8x128xf32>
    %56 = vector.broadcast %4 : vector<1x128xf32> to vector<8x128xf32>
    %57 = arith.addf %55, %56 : vector<8x128xf32>
    %c0_30 = arith.constant 0 : index
    %c0_31 = arith.constant 0 : index
    %58 = vector.load %arg9[%c0_30, %c0_31] : memref<8x128xf32, #tpu.memory_space<vmem>>, vector<8x128xf32>
    tpu.vector_store %arg9[%c0_30, %c0_31], %57 {strides = array<i32>} : memref<8x128xf32, #tpu.memory_space<vmem>>, vector<8x128xf32>,
    return
  }
  func.func @transform_1(%arg0: i32, %arg1: memref<16xi32, #tpu.memory_space<smem>>) -> (i32, i32) {
    %c0_i32 = arith.constant 0 : i32
    %c0_i32_0 = arith.constant 0 : i32
    return %arg0, %c0_i32 : i32, i32
  }
  func.func @transform_2(%arg0: i32, %arg1: memref<16xi32, #tpu.memory_space<smem>>) -> (i32, i32) {
    %c0_i32 = arith.constant 0 : i32
    %c0_i32_0 = arith.constant 0 : i32
    return %arg0, %c0_i32 : i32, i32
  }
  func.func @transform_3(%arg0: i32, %arg1: memref<16xi32, #tpu.memory_space<smem>>) -> (i32, i32, i32) {
    %c0_i32 = arith.constant 0 : i32
    %c0_i32_0 = arith.constant 0 : i32
    %c0_i32_1 = arith.constant 0 : i32
    %c0_i32_2 = arith.constant 0 : i32
    return %c0_i32, %c0_i32_0, %c0_i32_1 : i32, i32, i32
  }
  func.func @transform_4(%arg0: i32, %arg1: memref<16xi32, #tpu.memory_space<smem>>) -> (i32, i32) {
    %c0_i32 = arith.constant 0 : i32
    %c0_i32_0 = arith.constant 0 : i32
    %c0_i32_1 = arith.constant 0 : i32
    return %c0_i32, %c0_i32_0 : i32, i32
  }
  func.func @transform_5(%arg0: i32, %arg1: memref<16xi32, #tpu.memory_space<smem>>) -> (i32, i32) {
    %c0_i32 = arith.constant 0 : i32
    %c0_i32_0 = arith.constant 0 : i32
    %c0_i32_1 = arith.constant 0 : i32
    return %c0_i32, %c0_i32_0 : i32, i32
  }
  func.func @transform_6(%arg0: i32, %arg1: memref<16xi32, #tpu.memory_space<smem>>) -> (i32, i32) {
    %c0_i32 = arith.constant 0 : i32
    %c0_i32_0 = arith.constant 0 : i32
    %c0_i32_1 = arith.constant 0 : i32
    return %c0_i32, %c0_i32_0 : i32, i32
  }
  func.func @transform_7(%arg0: i32, %arg1: memref<16xi32, #tpu.memory_space<smem>>) -> (i32, i32) {
    %c0_i32 = arith.constant 0 : i32
    %c0_i32_0 = arith.constant 0 : i32
    return %arg0, %c0_i32 : i32, i32
  }
}

</mosaic_0001>

<bundles_post_ra>
// kernel: tpu_custom_call.1
= control target key start
LH: loop header
LB: loop body
LE: loop exit
PB: predicated region body
PF: predicated region fallthrough
CT: control target
= control target key end

     0   :  { %s1194_s0 = inlined_call_operand.vmem [shape: s32[16], index: 0, kind: input, shape index: {}]   ;;  %s1195_s1 = inlined_call_operand.hbm [shape: f32[128,128], index: 1, kind: input, shape index: {}]   ;;  %s1196_s2 = inlined_call_operand.vmem [shape: s32[16,1], index: 2, kind: input, shape index: {}]   ;;  %s1197_s3 = inlined_call_operand.vmem [shape: s32[16,1], index: 3, kind: input, shape index: {}]   ;;  %s1198_s4 = inlined_call_operand.hbm [shape: bf16[2,64,128], index: 4, kind: input, shape index: {}]   ;;  %s1199_s5 = inlined_call_operand.vmem [shape: f32[2,128], index: 5, kind: input, shape index: {}]   ;;  %s1200_s6 = inlined_call_operand.vmem [shape: f32[1,128], index: 6, kind: input, shape index: {}]   ;;  %s1201_s7 = inlined_call_operand.vmem [shape: f32[1,128], index: 7, kind: input, shape index: {}]   ;;  %s1202_s8 = inlined_call_operand.hbm [shape: f32[16,128], index: 8, kind: output, shape index: {}]  }
   0x1   :  { %1208 = sst [smem:[#allocation20_spill]] %s1196_s2  ;;  %s13_s29 = sshll.u32 %s1194_s0, 4  ;;  %s14_s29 = int_to_ptr.vmem [resolvable:$true] %s13_s29 }
   0x2   :  { %1209 = sst [smem:[#allocation21_spill]] %s1197_s3  ;;  %s788_s30 = scalar_lea.vmem %s14_s29, 16 }
   0x3   :  { %1210 = sst [smem:[#allocation22_spill]] %s1198_s4  ;;  %p789_p0 = scmp.ne.s32.totalorder %s14_s29, %s788_s30 }
   0x4   :  { %p793_p1 = scmp.lt.s32.totalorder %s14_s29, %s14_s29  ;;  %p794_p2 = scmp.lt.s32.totalorder %s788_s30, %s788_s30 }
   0x6   :  { %p795_p3 = por %p794_p2, %p793_p1 }
   0x8   :  { %p796_p4 = pnand %p795_p3, %p789_p0 }
   0xa   :  { %799 = shalt.err (!%p796_p4)  }
   0xb   :  { %s940_s9 = smov [#allocation5]  }
   0xc   :  { %16 = dma.vmem_to_smem %s14_s29, 16, %s940_s9, [#allocation4] }
   0xd   :  { %904 = dma.done.wait [#allocation4], 16 }
   0xe   :  { %905 = vsyncadd [#allocation4], 4294967280 }
   0xf   :  { %18 = sfence }
  0x10   :  { %19 = vsyncpa [#allocation7], 0 }
  0x11   :  { %20 = vsyncpa [#allocation8], 0 }
  0x12   :  { %22 = vsyncpa [#allocation8 + $0x1], 0  ;;  %s997_s10 = smov 0   ;;  %s999_s11 = smov 0  }
  0x13   :  { %s1001_s0 = smov 0   ;;  %s1003_s12 = smov 0  }
  0x14 LB: > { %1211 = sst [smem:[#allocation18_spill]] %s926_s0  ;;  %s1018_s13 = sadd.s32 4294967295, %s930_s12   ;;  %s930_s12 = sphi %s1003_s12, %s1232_s12   ;;  %s926_s0 = sphi %s1001_s0, %s1229_s0   ;;  %s922_s11 = sphi %s999_s11, %s1231_s11   ;;  %s918_s10 = sphi %s997_s10, %s1230_s10  }
  0x15   : > { %s650_s14 = sadd.s32 4294967294, %s930_s12   ;;  %s1022_s15 = sadd.s32 1, %s930_s12  }
  0x16   : > { %s171_s16 = sadd.s32 1, %s926_s0  ;;  %s168_s17 = ssub.s32 %s930_s12, %s1022_s15 }
  0x17   : > { %p181_p5 = scmp.ne.s32.totalorder %s926_s0, %s922_s11  ;;  %p169_p6 = scmp.eq.s32.totalorder %s168_s17, 0 }
  0x18   : > { %p182_p7 = scmp.eq.s32.totalorder %s1018_s13, 1  ;;  %p187_p8 = scmp.ne.s32.totalorder %s922_s11, %s918_s10 }
  0x19   : > { %p188_p9 = scmp.eq.s32.totalorder %s650_s14, 1  ;;  %p651_p12 = scmp.ge.s32.totalorder %s930_s12, 1 }
  0x1a   : > { %s1033_s18 = scalar_select %p169_p6, %s926_s0, %s171_s16  }
  0x1b   : > { %p1035_p10 = por %p182_p7, %p181_p5  ;;  %p1039_p11 = por %p188_p9, %p187_p8 }
  0x1c   : > { %1212 = sst [smem:[#allocation19_spill]] %s1033_s18  ;;  %p195_p13 = scmp.lt.s32.totalorder %s930_s12, 3 }
  0x1d   : > { %s1213_s19 = scalar_select %p1035_p10, 1, 0 }
  0x1e   : > { %s1214_s20 = scalar_select %p1039_p11, 1, 0 }
  0x1f   : > { %p1203_p0 = scmp.eq.s32.totalorder %s1018_s13, 0  ;;  %p1046_p1 = pnand %p651_p12, %p195_p13 }
  0x20   : > { %s941_s22 = smov [#allocation6]   ;;  %s1217_s4 = sld [smem:[#allocation22_spill]] }
  0x21   : > { %s1215_s21 = scalar_select %p1046_p1, 1, 0 }
  0x22   : > { %s207_s23 = sshll.u32 %s941_s22, 4  ;;  %p719_p2 = pneg %p1046_p1  ;;  %s208_s23 = int_to_ptr.vmem [resolvable:$true] %s207_s23 }
  0x24   : > { %p1054_p3 = pnand %p1203_p0, %p719_p2 }
  0x26   : > { %s800_s27 = scalar_lea.hbm %s1217_s4, 1024  ;;  %p802_p5 = pneg %p1054_p3 }
  0x27   : > { %p801_p4 = scmp.ne.s32.totalorder %s1217_s4, %s800_s27  ;;  %p807_p8 = scmp.lt.u32.totalorder %s800_s27, %s1217_s4 }
  0x29   : > { %p803_p6 = pnand %p802_p5, %p801_p4 }
  0x2b   : > { %p804_p7 = pneg %p803_p6 }
  0x2d   : > { %p809_p9 = pnand %p807_p8, %p804_p7 }
  0x2f   : > { %812 = shalt.err (!%p809_p9)
}
  0x30   : > { %s813_s14 = scalar_lea.vmem %s208_s23, 1024  ;;  %p821_p0 = scmp.lt.s32.totalorder %s208_s23, %s208_s23 }
  0x31   : > { %p814_p12 = scmp.ne.s32.totalorder %s208_s23, %s813_s14  ;;  %p822_p11 = scmp.lt.s32.totalorder %s813_s14, %s813_s14 }
  0x33   : > { %p816_p13 = pnand %p814_p12, %p802_p5  ;;  %p823_p10 = por %p822_p11, %p821_p0 }
  0x35   : > { %p817_p2 = pneg %p816_p13 }
  0x37   : > { %p824_p1 = pnand %p823_p10, %p817_p2 }
  0x39   : > { %827 = shalt.err (!%p824_p1)
}
  0x3a   : > { %s942_s16 = smov 64   ;;  %s943_s17 = smov 4  }
  0x3b   : > { %722 = dma.hbm_to_vmem [thread:$0]  (!%p1054_p3), %s1217_s4, 1024, %s208_s23, [#allocation7], %s942_s16, %s942_s16, %s943_s17  }
  0x3c   : > { %p1218_p4 = scmp.ne.s32.totalorder %s1215_s21, 0 }
  0x3d   : > { %p1219_p6 = scmp.eq.s32.totalorder (!%p1218_p4), %s1018_s13, 0 }
  0x3e   : > { %246 = sbr.rel (%p1218_p4) target bundleno = 660 (0x294), region = 44 }
  0x45   : > { %907 = dma.done.wait (%p1219_p6), [#allocation7], 1024   ;;  %p1220_p5 = pmov %p1219_p6 }
  0x46   : > { %s1206_s26 = sand.u32 1, %s922_s11   ;;  %p279_p10 = scmp.lt.s32.totalorder %s1018_s13, 1 }
  0x47   : > { %909 = vsyncadd (%p1220_p5), [#allocation7], 4294966272  ;;  %s1084_s24 = sshll.u32 %s1206_s26, 3  ;;  %s659_s23 = sshll.u32 %s1018_s13, 3 }
  0x48   : > { %s280_s21 = scalar_select %p279_p10, %s1018_s13, 1 }
  0x49   : > { %s1221_s2 = sld [smem:[#allocation20_spill]]  ;;  %s1222_s3 = sld [smem:[#allocation21_spill]] }
  0x4a   : > { %s657_s27 = sshll.u32 %s280_s21, 3  ;;  %s1099_s22 = smov 0  }
  0x4f   : > { %s1091_s30 = scalar_lea.vmem %s1221_s2, %s657_s27  ;;  %s1096_s16 = scalar_lea.vmem %s1222_s3, %s657_s27 }
  0x50 LB: >> { %s295_s25 = sadd.s32 %s934_s22, %s659_s23  ;;  %s299_s28 = scalar_lea.vmem [#allocation2], %s934_s22  ;;  %s934_s22 = sphi %s1099_s22, %s294_s22  }
  0x51   : >> { %s296_s21 = sld [smem:[#allocation5 + %s295_s25]]  ;;  %s307_s29 = sshll.u32 %s299_s28, 4  ;;  %s308_s29 = int_to_ptr.vmem [resolvable:$true] %s307_s29 }
  0x52   : >> { %s830_s4 = scalar_lea.hbm %s1195_s1, 2048 }
  0x57   : >> { %s660_s9 = sshll.u32 %s296_s21, 4 }
  0x58   : >> { %s298_s26 = scalar_lea.hbm %s1195_s1, %s660_s9 }
  0x59   : >> { %s828_s17 = scalar_lea.hbm %s298_s26, 16  ;;  %p831_p0 = scmp.lt.u32.totalorder %s298_s26, %s1195_s1 }
  0x5a   : >> { %p829_p11 = scmp.ne.s32.totalorder %s298_s26, %s828_s17  ;;  %p832_p1 = scmp.lt.u32.totalorder %s830_s4, %s828_s17 }
  0x5b   : >> { %p834_p7 = scmp.lt.u32.totalorder %s828_s17, %s298_s26 }
  0x5c   : >> { %p833_p3 = por %p832_p1, %p831_p0 }
  0x5e   : >> { %p835_p8 = por %p834_p7, %p833_p3 }
  0x60   : >> { %p836_p9 = pnand %p835_p8, %p829_p11 }
  0x62   : >> { %839 = shalt.err (!%p836_p9)  }
  0x63   : >> { %s840_s25 = scalar_lea.vmem %s308_s29, 16  ;;  %s944_s21 = smov [#allocation2]  }
  0x64   : >> { %p841_p12 = scmp.ne.s32.totalorder %s308_s29, %s840_s25  ;;  %s842_s28 = sshll.u32 %s944_s21, 4  ;;  %s843_s28 = int_to_ptr.vmem [resolvable:$false] %s842_s28 }
  0x65   : >> { %s844_s9 = scalar_lea.vmem %s843_s28, 128  ;;  %p845_p13 = scmp.lt.s32.totalorder %s308_s29, %s843_s28 }
  0x66   : >> { %p846_p2 = scmp.lt.s32.totalorder %s844_s9, %s840_s25 }
  0x68   : >> { %p847_p4 = por %p846_p2, %p845_p13 }
  0x6a   : >> { %p848_p6 = pnand %p847_p4, %p841_p12 }
  0x6c   : >> { %851 = shalt.err (!%p848_p6)  }
  0x6d   : >> { %310 = dma.hbm_to_vmem [thread:$0]  %s298_s26, 16, %s308_s29, [#allocation3] }
  0x6e   : >> { %s294_s22 = sadd.s32 1, %s934_s22  }
  0x6f   : >> { %p291_p5 = scmp.ge.s32.totalorder %s294_s22, 8  }
  0x70   : > { %v1123_v0 = vld [vmem:[%s1200_s6] ss:$0 sm:$0xff] (%p291_p5)  ;;  %v313_v2 = vld [vmem:[#allocation6] sm:$0xf] (%p291_p5)  ;;  %v314_v3 = vld [vmem:[#allocation6 + $0x4] sm:$0xf] (%p291_p5) }
  0x71   : > { %293 = sbr.rel (!%p291_p5) target bundleno = 80 (0x50), region = 108  ;;  %v1128_v1 = vld [vmem:[%s1201_s7] ss:$0 sm:$0xff] (%p291_p5)  ;;  %v315_v4 = vld [vmem:[#allocation6 + $0x8] sm:$0xf] (%p291_p5)  ;;  %s936_s23 = smov (%p291_p5), 0  }
  0x72   : > { %v316_v5 = vld [vmem:[#allocation6 + $0xc] sm:$0xf] (%p291_p5)  ;;  %v317_v6 = vld [vmem:[#allocation6 + $0x10] sm:$0xf] (%p291_p5)  ;;  %v318_v7 = vld [vmem:[#allocation6 + $0x14] sm:$0xf] (%p291_p5) }
  0x73   : > { %v319_v8 = vld [vmem:[#allocation6 + $0x18] sm:$0xf] (%p291_p5)  ;;  %v320_v9 = vld [vmem:[#allocation6 + $0x1c] sm:$0xf] (%p291_p5)  ;;  %v322_v10 = vld [vmem:[#allocation6 + $0x20] sm:$0xf] (%p291_p5) }
  0x74   : > { %v323_v11 = vld [vmem:[#allocation6 + $0x24] sm:$0xf] (%p291_p5)  ;;  %v324_v12 = vld [vmem:[#allocation6 + $0x28] sm:$0xf] (%p291_p5)  ;;  %v325_v13 = vld [vmem:[#allocation6 + $0x2c] sm:$0xf] (%p291_p5) }
  0x75   : > { %v326_v14 = vld [vmem:[#allocation6 + $0x30] sm:$0xf] (%p291_p5)  ;;  %v327_v15 = vld [vmem:[#allocation6 + $0x34] sm:$0xf] (%p291_p5)  ;;  %v328_v16 = vld [vmem:[#allocation6 + $0x38] sm:$0xf] (%p291_p5) }
  0x76   : > { %v329_v17 = vld [vmem:[#allocation6 + $0x3c] sm:$0xf] (%p291_p5)  ;;  %v1133_v18 = vld [vmem:[%s1199_s5] sm:$0x3] (%p291_p5) }
  0x78 LB: >> { %910 = dma.done.wait [#allocation3], 16  ;;  %s938_s23 = sphi %s936_s23, %s336_s23  }
  0x79   : >> { %911 = vsyncadd [#allocation3], 4294967280  ;;  %s336_s23 = sadd.s32 1, %s938_s23  }
  0x7a   : >> { %p333_p10 = scmp.ge.s32.totalorder %s336_s23, 8  }
  0x7b   : > { %v341_v19 = vld [vmem:[%s1091_s30] sm:$0xff] (%p333_p10)  ;;  %v662_v21 = vcombine.low (%p333_p10), %v322_v10, %v323_v11  ;;  %v667_v22 = vcombine.low (%p333_p10), %v313_v2, %v314_v3  ;;  %v945_v23 = vmov (%p333_p10), 0   ;;  %v946_v24 = vmov (%p333_p10), 0.0   ;;  %s675_s30 = sshll.u32 (%p333_p10), %s1018_s13, 7  ;;  %s1225_s25 = sand.u32 (%p333_p10), 1, %s922_s11  }
  0x7c   : > { %335 = sbr.rel (!%p333_p10) target bundleno = 120 (0x78), region = 119  ;;  %v342_v20 = vld [vmem:[%s1096_s16] sm:$0xff] (%p333_p10)  ;;  %785 = vset.pattern.permute.xlu0 (%p333_p10), %v945_v23  ;;  %689 = vmatprep.subr.bf16.mxu0 (%p333_p10), %v946_v24  ;;  %v663_v26 = vcombine.low (%p333_p10), %v324_v12, %v325_v13  ;;  %v668_v27 = vcombine.low (%p333_p10), %v315_v4, %v316_v5  ;;  %vm947_vm0 = vmmov (%p333_p10), 0   ;;  %v664_v28 = vcombine.low (%p333_p10), %v326_v14, %v327_v15  ;;  %s1223_s16 = scalar_lea.vmem (%p333_p10), [#allocation9], %s1084_s24 }
  0x7d   : > { %346 = vperm.xlu0 (%p333_p10), %785, %v341_v19   ;;  %v485_v25 = vcvt.s32.f32 (%p333_p10), %v342_v20  ;;  %701 = vmatprep.subr.bf16.mxu1 (%p333_p10), %v946_v24  ;;  %v669_v29 = vcombine.low (%p333_p10), %v317_v6, %v318_v7  ;;  %v665_v30 = vcombine.low (%p333_p10), %v328_v16, %v329_v17  ;;  %v670_v31 = vcombine.low (%p333_p10), %v319_v8, %v320_v9  ;;  %v340_v44 = vld [vmem:[#allocation2] sm:$0xff] (%p333_p10)  ;;  %s548_s17 = sshll.u32 (%p333_p10), %s1223_s16, 4  ;;  %s1148_s27 = scalar_lea.hbm (%p333_p10), %s1202_s8, %s675_s30  ;;  %s1150_s17 = int_to_ptr.vmem [resolvable:$true] %s548_s17 }
  0x7e   : > { %690 = vmatpush3.bf16.msra.mxu0 (%p333_p10), %v662_v21  ;;  %702 = vmatpush3.bf16.msra.mxu1 (%p333_p10), %v667_v22  ;;  %v343_v32 = vlaneseq (%p333_p10)  ;;  %vm376_vm2 = vcmask (%p333_p10), 523264   ;;  %v492_v38 = vrot.slane (%p333_p10), %v1133_v18, 7  ;;  %s1224_s14 = smov (%p333_p10), %s1223_s16  ;;  %s535_s13 = scalar_lea.sflag (%p333_p10), [#allocation8], %s1225_s25 }
  0x7f   : > { %691 = vmatprep.subr.bf16.mxu0 (%p333_p10), %v946_v24  ;;  %703 = vmatprep.subr.bf16.mxu1 (%p333_p10), %v946_v24  ;;  %s852_s21 = scalar_lea.vmem (%p333_p10), %s1150_s17, 128  ;;  %p1226_p0 = scmp.ne.s32.totalorder (%p333_p10), %s1213_s19, 0 }
  0x80   : > { %697 = vmatprep.mubr.msk.bf16.mxu0 (%p333_p10), %vm947_vm0, %v946_v24  ;;  %709 = vmatprep.mubr.msk.bf16.mxu1 (%p333_p10), %vm947_vm0, %v946_v24  ;;  %v344_v33 = vand.u32 (%p333_p10), 127, %v343_v32  ;;  %v487_v37 = vshrl.u32 (%p333_p10), %v343_v32, 7  ;;  %v494_v39 = vsub.f32 (%p333_p10), %v1133_v18, %v492_v38  ;;  %p853_p11 = scmp.ne.s32.totalorder (%p333_p10), %s1150_s17, %s852_s21  ;;  %s948_s28 = smov (%p333_p10), [#allocation9]  }
  0x81   : > { %497 = vperm.xlu0 (%p333_p10), %785, %v485_v25   ;;  %s856_s9 = sshll.u32 (%p333_p10), %s948_s28, 4  ;;  %s857_s9 = int_to_ptr.vmem [resolvable:$false] %s856_s9 }
  0x82   : > { %692 = vmatpush3.bf16.msra.mxu0 (%p333_p10), %v663_v26  ;;  %704 = vmatpush3.bf16.msra.mxu1 (%p333_p10), %v668_v27  ;;  %v502_v40 = vsub.s32 (%p333_p10), 1, %v487_v37  ;;  %v488_v41 = vsub.s32 (%p333_p10), 0, %v487_v37  ;;  %p854_p1 = pnand (%p333_p10), %p853_p11, %p1226_p0  ;;  %s858_s2 = scalar_lea.vmem (%p333_p10), %s857_s9, 256 }
  0x83   : > { %693 = vmatprep.subr.bf16.mxu0 %v946_v24  ;;  %705 = vmatprep.subr.bf16.mxu1 %v946_v24  ;;  %p859_p7 = scmp.lt.s32.totalorder %s1150_s17, %s857_s9  ;;  %p860_p8 = scmp.lt.s32.totalorder %s858_s2, %s852_s21 }
  0x84   : > { %v503_v46 = vrot.slane %v494_v39, %v502_v40  ;;  %v489_v48 = vrot.slane %v1133_v18, %v488_v41  ;;  %p855_p3 = pneg %p854_p1 }
  0x85   : > { %p861_p9 = por %p860_p8, %p859_p7 }
  0x86   : > { %694 = vmatpush3.bf16.msra.mxu0 %v664_v28  ;;  %706 = vmatpush3.bf16.msra.mxu1 %v669_v29 }
  0x87   : > { %695 = vmatprep.subr.bf16.mxu0 %v946_v24  ;;  %707 = vmatprep.subr.bf16.mxu1 %v946_v24  ;;  %p862_p12 = pnand %p861_p9, %p855_p3 }
  0x8a   : > { %696 = vmatpush3.bf16.msra.mxu0 %v665_v30  ;;  %708 = vmatpush3.bf16.msra.mxu1 %v670_v31 }
  0xfc   : > { %v347_v34 = vpop.permute.xlu0 %346 }
  0xfd   : > { %vm348_vm1 = vcmp.eq.s32.totalorder %v347_v34, %v344_v33 }
  0xfe   : > { %v661_v35 = vsel %vm348_vm1, 1.0, %v946_v24 }
  0xff   : > { %v351_v36 = vpack.c.bf16 %v661_v35, %v661_v35 }
 0x100   : > { %v498_v42 = vpop.permute.xlu0 %497 }
 0x101   : > { %698 = vmatmul.mubr.msk.bf16.vlgmr.msra.gmra.mrb[0].mxu0 %vm376_vm2, %v351_v36  ;;  %710 = vmatmul.mubr.msk.bf16.vlgmr.msra.gmra.mrb[0].mxu1 %vm376_vm2, %v351_v36  ;;  %v504_v56 = vmul.f32 %v503_v46, %v498_v42 }
 0x1d4   : > { %v414_v43 = vpop.f32.mrb[0].mxu0  ;;  %v478_v45 = vpop.f32.mrb[0].mxu1 }
 0x1d5   : > { %v479_v47 = vadd.f32 %v478_v45, %v414_v43  ;;  %v699_v49 = vpop.f32.mrb[1].mxu0  ;;  %v711_v50 = vpop.f32.mrb[1].mxu1 }
 0x1d6   : > { %v417_v51 = vpop.f32.mrb[2].mxu0  ;;  %v481_v52 = vpop.f32.mrb[2].mxu1 }
 0x1d7   : > { %v484_v53 = vadd.f32 %v479_v47, %v340_v44  ;;  %v700_v54 = vpop.f32.mrb[3].mxu0  ;;  %v712_v55 = vpop.f32.mrb[3].mxu1 }
 0x1d9   : > { %v490_v57 = vadd.f32 %v489_v48, %v484_v53 }
 0x1db   : > { %v505_v58 = vadd.f32 %v504_v56, %v490_v57 }
 0x1dd   : > { %506 = vadd.xlane.f32.xlu1 %v505_v58  ;;  %v509_v59 = vmul.f32 %v505_v58, %v505_v58 }
 0x1e1   : > { %510 = vadd.xlane.f32.xlu1 %v509_v59 }
 0x26a   : > { %v507_v60 = vpop.xlane.xlu1 %506 }
 0x26b   : > { %v508_v61 = vmul.f32 0.0078125, %v507_v60 }
 0x26d   : > { %v513_v63 = vmul.f32 %v508_v61, %v508_v61  ;;  %v515_v5 = vsub.f32 %v505_v58, %v508_v61 }
 0x26e   : > { %v511_v62 = vpop.xlane.xlu1 %510 }
 0x26f   : > { %v512_v2 = vmul.f32 0.0078125, %v511_v62 }
 0x271   : > { %v514_v3 = vsub.f32 %v512_v2, %v513_v63 }
 0x273   : > { %v516_v4 = vadd.f32 1e-12, %v514_v3 }
 0x275   : > { %786 = vrsqrt.f32 %v516_v4 }
 0x27f   : > { %v787_v6 = vpop.eup %786 }
 0x280   : > { %v518_v7 = vmul.f32 %v787_v6, %v515_v5 }
 0x282   : > { %v525_v8 = vmul.f32 %v1123_v0, %v518_v7 }
 0x284   : > { %v532_v9 = vadd.f32 %v1128_v1, %v525_v8 }
 0x286   : > { %533 = vst [vmem:[%s1224_s14] sm:$0xff] %v532_v9 }
 0x287   : > { %865 = shalt.err (!%p862_p12)
}
 0x288   : > { %s866_s24 = scalar_lea.hbm %s1148_s27, 128  ;;  %s870_s0 = scalar_lea.hbm %s1202_s8, 256 }
 0x289   : > { %p867_p13 = scmp.ne.s32.totalorder %s1148_s27, %s866_s24  ;;  %p871_p6 = scmp.lt.u32.totalorder %s1148_s27, %s1202_s8 }
 0x28a   : > { %p872_p5 = scmp.lt.u32.totalorder %s870_s0, %s866_s24  ;;  %p874_p11 = scmp.lt.u32.totalorder %s866_s24, %s1148_s27 }
 0x28b   : > { %p868_p2 = pnand %p867_p13, %p1226_p0 }
 0x28c   : > { %p873_p10 = por %p872_p5, %p871_p6 }
 0x28d   : > { %p869_p4 = pneg %p868_p2 }
 0x28e   : > { %p875_p1 = por %p874_p11, %p873_p10 }
 0x290   : > { %p876_p3 = pnand %p875_p1, %p869_p4 }
 0x292   : > { %879 = shalt.err (!%p876_p3)
}
 0x293   : > { %717 = dma.vmem_to_hbm [thread:$0]  (%p1226_p0), %s1150_s17, 128, %s1148_s27, %s535_s13  }
 0x294 PF: > { %p729_p7 = scmp.ge.s32.totalorder %s930_s12, 2  ;;  %s560_s23 = sand.u32 1, %s918_s10  }
 0x295   : > { %p1227_p8 = scmp.ne.s32.totalorder %s1214_s20, 0  ;;  %s561_s30 = scalar_lea.sflag [#allocation8], %s560_s23 }
 0x297   : > { %p724_p9 = pnand %p729_p7, %p1227_p8 }
 0x299   : > { %913 = dma.done.wait (!%p724_p9), %s561_s30, 128  }
 0x29a   : > { %915 = vsyncadd (!%p724_p9), %s561_s30, 4294967168  ;;  %s1228_s16 = sld [smem:[#allocation18_spill]]  ;;  %s1229_s0 = sld [smem:[#allocation19_spill]] }
 0x29b   : > { %p25_p12 = scmp.ge.s32.totalorder %s1022_s15, 4   ;;  %s1230_s10 = smov %s922_s11 }
 0x29c   : > { %s1232_s12 = smov %s1022_s15 }
 0x29d   :  { %27 = sbr.rel (!%p25_p12) target bundleno = 20 (0x14), region = 130 }
 0x2a0   : > { %s1231_s11 = smov %s1228_s16 }
 0x2a4   :  { %566 = vsyncpa [#allocation7], 1 }
 0x2a5   :  { %568 = vsyncpa [#allocation7 + $0x1], 1 }
 0x2a6   :  { %569 = vsyncpa [#allocation8], 1 }
 0x2a7   :  { %571 = vsyncpa [#allocation8 + $0x1], 1 }
 0x2a8   :  { %572 = vsyncmov [#allocation3] }
 0x2ab   :  { %s573_s12 = vpop.sfrf %572 }
 0x2ac   :  { %p678_p0 = scmp.ne.s32.totalorder %s573_s12, 0 }
 0x2ae   :  { %577 = shalt.err (%p678_p0)  }

</bundles_post_ra>
